<compile_context>
chip_gen: v7x
topology: tpu7x:2x2x1
jax: 0.10.0
libtpu: 0.0.40
codegen_flags: <defaults>
</compile_context>

<pallas_src>
import jax
import jax.numpy as jnp
from jax.experimental import pallas as pl
from jax.experimental.pallas import tpu as pltpu


def _fd_kernel(x_ref,
               w1_ref, b1_ref,      # fused encoder layer 1:       (F, 4C), (1, 4C)
               w2_ref, b2_ref,      # block-diag encoder layer 2:  (4C, 2C), (1, 2C)
               wd1_ref, bd1_ref,    # decoder layer 1:             (2C, 3C), (1, 3C)
               wd2_ref, bd2_ref,    # decoder layer 2:             (3C, F), (1, F)
               ev_ref, rec_ref):
    x = x_ref[...]

    # Fused encoder_common / encoder_variance first layer (shared input x).
    h = jnp.dot(x, w1_ref[...], preferred_element_type=jnp.float32) + b1_ref[...]
    h = jnp.maximum(h, 0.0)

    # Block-diagonal second layer -> ev = [E_c | V] packed, no concat needed.
    ev = jnp.dot(h, w2_ref[...], preferred_element_type=jnp.float32) + b2_ref[...]

    # Decoder: Linear(2C -> 3C) -> ReLU -> Linear(3C -> F).
    hd = jnp.dot(ev, wd1_ref[...], preferred_element_type=jnp.float32) + bd1_ref[...]
    hd = jnp.maximum(hd, 0.0)
    rec = jnp.dot(hd, wd2_ref[...], preferred_element_type=jnp.float32) + bd2_ref[...]

    ev_ref[...] = ev.astype(ev_ref.dtype)
    rec_ref[...] = rec.astype(rec_ref.dtype)


def _round_up(n, m):
    return (n + m - 1) // m * m


def _fuse_params(p):
    """Fuse shared-input first layers into one (F,4C) matmul and build a
    block-diagonal (4C,2C) second layer so [E_c | V] is one matmul output."""
    C = p["wc2"].shape[1]
    w1 = jnp.concatenate([p["wc1"], p["wv1"]], axis=1)          # (F, 4C)
    b1 = jnp.concatenate([p["bc1"], p["bv1"]], axis=1)          # (1, 4C)
    w2 = jnp.zeros((4 * C, 2 * C), p["wc2"].dtype)
    w2 = w2.at[:2 * C, :C].set(p["wc2"])
    w2 = w2.at[2 * C:, C:].set(p["wv2"])                        # (4C, 2C) block-diag
    b2 = jnp.concatenate([p["bc2"], p["bv2"]], axis=1)          # (1, 2C)
    return w1, b1, w2, b2, p["wd1"], p["bd1"], p["wd2"], p["bd2"]


def feature_decomposer_v2(x, params, *, batch_tile=256):
    """x: (B, F) float32; params: dict of transposed weights / (1, out) biases.
    Returns (E_c, V, reconstructed) with shapes (B, C), (B, C), (B, F)."""
    B, F = x.shape
    C = params["wc2"].shape[1]

    w1, b1, w2, b2, wd1, bd1, wd2, bd2 = _fuse_params(params)

    # Batch tiling: pad B up to a multiple of the tile so the grid is exact.
    tb = min(batch_tile, _round_up(B, 8))
    b_pad = _round_up(B, tb)
    if b_pad != B:
        x = jnp.pad(x, ((0, b_pad - B), (0, 0)))
    grid = (b_pad // tb,)

    # Weights/biases: full-extent resident blocks (constant index_map -> DMA'd once).
    def _res(a):
        return pl.BlockSpec(a.shape, lambda i: (0, 0))

    in_specs = [pl.BlockSpec((tb, F), lambda i: (i, 0)),
                _res(w1), _res(b1), _res(w2), _res(b2),
                _res(wd1), _res(bd1), _res(wd2), _res(bd2)]
    out_specs = (pl.BlockSpec((tb, 2 * C), lambda i: (i, 0)),
                 pl.BlockSpec((tb, F), lambda i: (i, 0)))

    flops_per_row = 2 * (F * 4 * C + 4 * C * 2 * C + 2 * C * 3 * C + 3 * C * F)
    weight_bytes = int(sum(4 * a.size for a in (w1, b1, w2, b2, wd1, bd1, wd2, bd2)))
    cost = pl.CostEstimate(
        flops=int(b_pad * flops_per_row),
        transcendentals=0,
        bytes_accessed=int(4 * b_pad * (F + 2 * C + F) + weight_bytes))

    ev, rec = pl.pallas_call(
        _fd_kernel,
        grid=grid,
        in_specs=in_specs,
        out_specs=out_specs,
        out_shape=(jax.ShapeDtypeStruct((b_pad, 2 * C), x.dtype),
                   jax.ShapeDtypeStruct((b_pad, F), x.dtype)),
        compiler_params=pltpu.CompilerParams(
            dimension_semantics=("parallel",),       # megacore sharding on v7x
            vmem_limit_bytes=32 * 1024 * 1024),      # > v5e's 16 MiB default, safe on v7x
        cost_estimate=cost,
    )(x, w1, b1, w2, b2, wd1, bd1, wd2, bd2)

    # Split packed [E_c | V] slab and strip batch padding in the wrapper.
    return ev[:B, :C], ev[:B, C:], rec[:B]


def init_params(key, feature_dim, common_dim):
    """Deterministic synthetic init (PyTorch Linear shapes, stored transposed)."""
    def linear(k, fan_in, fan_out):
        kw, kb = jax.random.split(k)
        bound = 1.0 / jnp.sqrt(fan_in)
        w = jax.random.uniform(kw, (fan_in, fan_out), jnp.float32, -bound, bound)
        b = jax.random.uniform(kb, (1, fan_out), jnp.float32, -bound, bound)
        return w, b

    ks = jax.random.split(key, 6)
    F, C = feature_dim, common_dim
    wc1, bc1 = linear(ks[0], F, 2 * C)
    wc2, bc2 = linear(ks[1], 2 * C, C)
    wv1, bv1 = linear(ks[2], F, 2 * C)
    wv2, bv2 = linear(ks[3], 2 * C, C)
    wd1, bd1 = linear(ks[4], 2 * C, 3 * C)
    wd2, bd2 = linear(ks[5], 3 * C, F)
    return dict(wc1=wc1, bc1=bc1, wc2=wc2, bc2=bc2,
                wv1=wv1, bv1=bv1, wv2=wv2, bv2=bv2,
                wd1=wd1, bd1=bd1, wd2=wd2, bd2=bd2)


def reference(x, p):
    relu = lambda t: jnp.maximum(t, 0.0)
    e_c = relu(x @ p["wc1"] + p["bc1"]) @ p["wc2"] + p["bc2"]
    v = relu(x @ p["wv1"] + p["bv1"]) @ p["wv2"] + p["bv2"]
    comb = jnp.concatenate([e_c, v], axis=-1)
    rec = relu(comb @ p["wd1"] + p["bd1"]) @ p["wd2"] + p["bd2"]
    return e_c, v, rec


if __name__ == "__main__":
    B, F, C = 8, 32, 16
    key = jax.random.PRNGKey(0)
    kx, kp = jax.random.split(key)
    x = jax.random.normal(kx, (B, F), jnp.float32)
    params = init_params(kp, F, C)

    e_c, v, rec = feature_decomposer_v2(x, params)
    jax.block_until_ready((e_c, v, rec))

    e_c_ref, v_ref, rec_ref = reference(x, params)
    assert e_c.shape == (B, C) and v.shape == (B, C) and rec.shape == (B, F)
    assert jnp.allclose(e_c, e_c_ref, atol=1e-4, rtol=1e-4)
    assert jnp.allclose(v, v_ref, atol=1e-4, rtol=1e-4)
    assert jnp.allclose(rec, rec_ref, atol=1e-4, rtol=1e-4)

    print("KERNEL_OK")
</pallas_src>

<mosaic_0001>
module attributes {stable_mosaic.version = 11 : i64} {
  func.func @_fd_kernel(%arg0: i32, %arg1: memref<8x32xf32, #tpu.memory_space<vmem>>, %arg2: memref<32x64xf32, #tpu.memory_space<vmem>>, %arg3: memref<1x64xf32, #tpu.memory_space<vmem>>, %arg4: memref<64x32xf32, #tpu.memory_space<vmem>>, %arg5: memref<1x32xf32, #tpu.memory_space<vmem>>, %arg6: memref<32x48xf32, #tpu.memory_space<vmem>>, %arg7: memref<1x48xf32, #tpu.memory_space<vmem>>, %arg8: memref<48x32xf32, #tpu.memory_space<vmem>>, %arg9: memref<1x32xf32, #tpu.memory_space<vmem>>, %arg10: memref<8x32xf32, #tpu.memory_space<vmem>>, %arg11: memref<8x32xf32, #tpu.memory_space<vmem>>) attributes {dimension_semantics = [#tpu.dimension_semantics<parallel>], iteration_bounds = array<i64: 1>, scalar_prefetch = 0 : i64, scratch_operands = 0 : i64, tpu.core_type = #tpu.core_type<tc>, window_params = [{transform_indices = @transform_0, window_bounds = array<i64: 8, 32>}, {pipeline_mode = #tpu.pipeline_mode<synchronous>, transform_indices = @transform_1, window_bounds = array<i64: 32, 64>}, {pipeline_mode = #tpu.pipeline_mode<synchronous>, transform_indices = @transform_2, window_bounds = array<i64: 1, 64>}, {pipeline_mode = #tpu.pipeline_mode<synchronous>, transform_indices = @transform_3, window_bounds = array<i64: 64, 32>}, {pipeline_mode = #tpu.pipeline_mode<synchronous>, transform_indices = @transform_4, window_bounds = array<i64: 1, 32>}, {pipeline_mode = #tpu.pipeline_mode<synchronous>, transform_indices = @transform_5, window_bounds = array<i64: 32, 48>}, {pipeline_mode = #tpu.pipeline_mode<synchronous>, transform_indices = @transform_6, window_bounds = array<i64: 1, 48>}, {pipeline_mode = #tpu.pipeline_mode<synchronous>, transform_indices = @transform_7, window_bounds = array<i64: 48, 32>}, {pipeline_mode = #tpu.pipeline_mode<synchronous>, transform_indices = @transform_8, window_bounds = array<i64: 1, 32>}, {transform_indices = @transform_9, window_bounds = array<i64: 8, 32>}, {transform_indices = @transform_10, window_bounds = array<i64: 8, 32>}]} {
    %c0 = arith.constant 0 : index
    %c0_0 = arith.constant 0 : index
    %0 = vector.load %arg1[%c0, %c0_0] : memref<8x32xf32, #tpu.memory_space<vmem>>, vector<8x32xf32>
    %c0_1 = arith.constant 0 : index
    %c0_2 = arith.constant 0 : index
    %1 = vector.load %arg2[%c0_1, %c0_2] : memref<32x64xf32, #tpu.memory_space<vmem>>, vector<32x64xf32>
    %cst = arith.constant dense<0.000000e+00> : vector<8x64xf32>
    %2 = tpu.matmul %0, %1, %cst {dimension_numbers = #tpu.dot_dimension_numbers<[1], [0], [0], [1], [0, 0, 1, 1], [], []>} : vector<8x32xf32>, vector<32x64xf32>, vector<8x64xf32> -> vector<8x64xf32>
    %c0_3 = arith.constant 0 : index
    %c0_4 = arith.constant 0 : index
    %3 = vector.load %arg3[%c0_3, %c0_4] : memref<1x64xf32, #tpu.memory_space<vmem>>, vector<1x64xf32>
    %4 = vector.broadcast %3 : vector<1x64xf32> to vector<8x64xf32>
    %5 = arith.addf %2, %4 : vector<8x64xf32>
    %cst_5 = arith.constant 0.000000e+00 : f32
    %6 = vector.broadcast %cst_5 : f32 to vector<8x64xf32>
    %7 = arith.maximumf %5, %6 : vector<8x64xf32>
    %c0_6 = arith.constant 0 : index
    %c0_7 = arith.constant 0 : index
    %8 = vector.load %arg4[%c0_6, %c0_7] : memref<64x32xf32, #tpu.memory_space<vmem>>, vector<64x32xf32>
    %cst_8 = arith.constant dense<0.000000e+00> : vector<8x32xf32>
    %9 = tpu.matmul %7, %8, %cst_8 {dimension_numbers = #tpu.dot_dimension_numbers<[1], [0], [0], [1], [0, 0, 1, 1], [], []>} : vector<8x64xf32>, vector<64x32xf32>, vector<8x32xf32> -> vector<8x32xf32>
    %c0_9 = arith.constant 0 : index
    %c0_10 = arith.constant 0 : index
    %10 = vector.load %arg5[%c0_9, %c0_10] : memref<1x32xf32, #tpu.memory_space<vmem>>, vector<1x32xf32>
    %11 = vector.broadcast %10 : vector<1x32xf32> to vector<8x32xf32>
    %12 = arith.addf %9, %11 : vector<8x32xf32>
    %c0_11 = arith.constant 0 : index
    %c0_12 = arith.constant 0 : index
    %13 = vector.load %arg6[%c0_11, %c0_12] : memref<32x48xf32, #tpu.memory_space<vmem>>, vector<32x48xf32>
    %cst_13 = arith.constant dense<0.000000e+00> : vector<8x48xf32>
    %14 = tpu.matmul %12, %13, %cst_13 {dimension_numbers = #tpu.dot_dimension_numbers<[1], [0], [0], [1], [0, 0, 1, 1], [], []>} : vector<8x32xf32>, vector<32x48xf32>, vector<8x48xf32> -> vector<8x48xf32>
    %c0_14 = arith.constant 0 : index
    %c0_15 = arith.constant 0 : index
    %15 = vector.load %arg7[%c0_14, %c0_15] : memref<1x48xf32, #tpu.memory_space<vmem>>, vector<1x48xf32>
    %16 = vector.broadcast %15 : vector<1x48xf32> to vector<8x48xf32>
    %17 = arith.addf %14, %16 : vector<8x48xf32>
    %cst_16 = arith.constant 0.000000e+00 : f32
    %18 = vector.broadcast %cst_16 : f32 to vector<8x48xf32>
    %19 = arith.maximumf %17, %18 : vector<8x48xf32>
    %c0_17 = arith.constant 0 : index
    %c0_18 = arith.constant 0 : index
    %20 = vector.load %arg8[%c0_17, %c0_18] : memref<48x32xf32, #tpu.memory_space<vmem>>, vector<48x32xf32>
    %cst_19 = arith.constant dense<0.000000e+00> : vector<8x32xf32>
    %21 = tpu.matmul %19, %20, %cst_19 {dimension_numbers = #tpu.dot_dimension_numbers<[1], [0], [0], [1], [0, 0, 1, 1], [], []>} : vector<8x48xf32>, vector<48x32xf32>, vector<8x32xf32> -> vector<8x32xf32>
    %c0_20 = arith.constant 0 : index
    %c0_21 = arith.constant 0 : index
    %22 = vector.load %arg9[%c0_20, %c0_21] : memref<1x32xf32, #tpu.memory_space<vmem>>, vector<1x32xf32>
    %23 = vector.broadcast %22 : vector<1x32xf32> to vector<8x32xf32>
    %24 = arith.addf %21, %23 : vector<8x32xf32>
    %c0_22 = arith.constant 0 : index
    %c0_23 = arith.constant 0 : index
    %25 = vector.load %arg10[%c0_22, %c0_23] : memref<8x32xf32, #tpu.memory_space<vmem>>, vector<8x32xf32>
    tpu.vector_store %arg10[%c0_22, %c0_23], %12 {strides = array<i32>} : memref<8x32xf32, #tpu.memory_space<vmem>>, vector<8x32xf32>,
    %c0_24 = arith.constant 0 : index
    %c0_25 = arith.constant 0 : index
    %26 = vector.load %arg11[%c0_24, %c0_25] : memref<8x32xf32, #tpu.memory_space<vmem>>, vector<8x32xf32>
    tpu.vector_store %arg11[%c0_24, %c0_25], %24 {strides = array<i32>} : memref<8x32xf32, #tpu.memory_space<vmem>>, vector<8x32xf32>,
    return
  }
  func.func @transform_0(%arg0: i32) -> (i32, i32) {
    %c0_i32 = arith.constant 0 : i32
    %c0_i32_0 = arith.constant 0 : i32
    return %arg0, %c0_i32 : i32, i32
  }
  func.func @transform_1(%arg0: i32) -> (i32, i32) {
    %c0_i32 = arith.constant 0 : i32
    %c0_i32_0 = arith.constant 0 : i32
    %c0_i32_1 = arith.constant 0 : i32
    return %c0_i32, %c0_i32_0 : i32, i32
  }
  func.func @transform_2(%arg0: i32) -> (i32, i32) {
    %c0_i32 = arith.constant 0 : i32
    %c0_i32_0 = arith.constant 0 : i32
    %c0_i32_1 = arith.constant 0 : i32
    return %c0_i32, %c0_i32_0 : i32, i32
  }
  func.func @transform_3(%arg0: i32) -> (i32, i32) {
    %c0_i32 = arith.constant 0 : i32
    %c0_i32_0 = arith.constant 0 : i32
    %c0_i32_1 = arith.constant 0 : i32
    return %c0_i32, %c0_i32_0 : i32, i32
  }
  func.func @transform_4(%arg0: i32) -> (i32, i32) {
    %c0_i32 = arith.constant 0 : i32
    %c0_i32_0 = arith.constant 0 : i32
    %c0_i32_1 = arith.constant 0 : i32
    return %c0_i32, %c0_i32_0 : i32, i32
  }
  func.func @transform_5(%arg0: i32) -> (i32, i32) {
    %c0_i32 = arith.constant 0 : i32
    %c0_i32_0 = arith.constant 0 : i32
    %c0_i32_1 = arith.constant 0 : i32
    return %c0_i32, %c0_i32_0 : i32, i32
  }
  func.func @transform_6(%arg0: i32) -> (i32, i32) {
    %c0_i32 = arith.constant 0 : i32
    %c0_i32_0 = arith.constant 0 : i32
    %c0_i32_1 = arith.constant 0 : i32
    return %c0_i32, %c0_i32_0 : i32, i32
  }
  func.func @transform_7(%arg0: i32) -> (i32, i32) {
    %c0_i32 = arith.constant 0 : i32
    %c0_i32_0 = arith.constant 0 : i32
    %c0_i32_1 = arith.constant 0 : i32
    return %c0_i32, %c0_i32_0 : i32, i32
  }
  func.func @transform_8(%arg0: i32) -> (i32, i32) {
    %c0_i32 = arith.constant 0 : i32
    %c0_i32_0 = arith.constant 0 : i32
    %c0_i32_1 = arith.constant 0 : i32
    return %c0_i32, %c0_i32_0 : i32, i32
  }
  func.func @transform_9(%arg0: i32) -> (i32, i32) {
    %c0_i32 = arith.constant 0 : i32
    %c0_i32_0 = arith.constant 0 : i32
    return %arg0, %c0_i32 : i32, i32
  }
  func.func @transform_10(%arg0: i32) -> (i32, i32) {
    %c0_i32 = arith.constant 0 : i32
    %c0_i32_0 = arith.constant 0 : i32
    return %arg0, %c0_i32 : i32, i32
  }
}

</mosaic_0001>

<bundles_post_ra>
// kernel: tpu_custom_call.1
= control target key start
LH: loop header
LB: loop body
LE: loop exit
PB: predicated region body
PF: predicated region fallthrough
CT: control target
= control target key end

     0   :  { %16 = vsyncpa [#allocation3], 0  ;;  %v590_v3 = vmov 0.0|0.0   ;;  %vm591_vm0 = vmmov 0   ;;  %v592_v6 = vmov 0.0   ;;  %s778_s0 = inlined_call_operand.vmem [shape: f32[8,32], index: 0, kind: input, shape index: {}]   ;;  %s779_s1 = inlined_call_operand.vmem [shape: f32[32,64], index: 1, kind: input, shape index: {}]   ;;  %s780_s2 = inlined_call_operand.vmem [shape: f32[1,64], index: 2, kind: input, shape index: {}]   ;;  %s781_s3 = inlined_call_operand.vmem [shape: f32[64,32], index: 3, kind: input, shape index: {}]   ;;  %s782_s4 = inlined_call_operand.vmem [shape: f32[1,32], index: 4, kind: input, shape index: {}]   ;;  %s783_s5 = inlined_call_operand.vmem [shape: f32[32,48], index: 5, kind: input, shape index: {}]   ;;  %s784_s6 = inlined_call_operand.vmem [shape: f32[1,48], index: 6, kind: input, shape index: {}]   ;;  %s785_s7 = inlined_call_operand.vmem [shape: f32[48,32], index: 7, kind: input, shape index: {}]   ;;  %s786_s8 = inlined_call_operand.vmem [shape: f32[1,32], index: 8, kind: input, shape index: {}]   ;;  %s787_s9 = inlined_call_operand.hbm [shape: f32[8,32], index: 9, kind: output, shape index: {0}]   ;;  %s788_s10 = inlined_call_operand.hbm [shape: f32[8,32], index: 10, kind: output, shape index: {1}]  }
   0x1   :  { %v37_v0 = vld [vmem:[%s779_s1] sm:$0xff]  ;;  %v38_v1 = vld [vmem:[%s779_s1 + $0x8] sm:$0xff]  ;;  %v39_v2 = vld [vmem:[%s779_s1 + $0x10] sm:$0xff]  ;;  %504 = vmatprep.subr.bf16.mxu1 %v590_v3  ;;  %456 = vmatprep.mubr.msk.f32.mxu1 %vm591_vm0, %v592_v6 }
   0x2   :  { %v505_v4 = vpack.c.bf16 %v38_v1, %v37_v0  ;;  %v40_v5 = vld [vmem:[%s779_s1 + $0x18] sm:$0xff]  ;;  %522 = vmatprep.subr.bf16.mxu0 %v590_v3  ;;  %486 = vmatprep.mubr.msk.f32.mxu0 %vm591_vm0, %v592_v6  ;;  %v123_v8 = vld [vmem:[%s781_s3] sm:$0xff]  ;;  %v124_v9 = vld [vmem:[%s781_s3 + $0x8] sm:$0xff] }
   0x3   :  { %v508_v7 = vpack.c.bf16 %v40_v5, %v39_v2 }
   0x4   :  { %506 = vmatpush3.bf16.msra.mxu1 %v505_v4 }
   0x5   :  { %507 = vmatprep.subr.bf16.mxu1 %v590_v3 }
   0x6   :  { %17 = vsyncpa [#allocation5], 0  ;;  %v36_v10 = vld [vmem:[%s778_s0] sm:$0xff]  ;;  %vm48_vm1 = vcmask 261120   ;;  %v511_v11 = vpack.c.bf16 %v124_v9, %v123_v8  ;;  %v125_v12 = vld [vmem:[%s781_s3 + $0x10] sm:$0xff]  ;;  %vm138_vm2 = vcmask 523264  }
   0x7   :  { %v126_v13 = vld [vmem:[%s781_s3 + $0x18] sm:$0xff]  ;;  %v127_v15 = vld [vmem:[%s781_s3 + $0x20] sm:$0xff]  ;;  %v128_v16 = vld [vmem:[%s781_s3 + $0x28] sm:$0xff]  ;;  %vm310_vm3 = vcmask 392192   ;;  %s593_s17 = smov [#allocation2]  }
   0x8   :  { %509 = vmatpush3.bf16.msra.mxu1 %v508_v7  ;;  %v514_v14 = vpack.c.bf16 %v126_v13, %v125_v12  ;;  %v517_v17 = vpack.c.bf16 %v128_v16, %v127_v15  ;;  %v129_v18 = vld [vmem:[%s781_s3 + $0x30] sm:$0xff]  ;;  %v130_v19 = vld [vmem:[%s781_s3 + $0x38] sm:$0xff]  ;;  %v212_v21 = vld [vmem:[%s783_s5] sm:$0xff]  ;;  %s392_s18 = sshll.u32 %s593_s17, 4  ;;  %s393_s18 = int_to_ptr.vmem [resolvable:$true] %s392_s18 }
   0x9   :  { %510 = vmatprep.subr.bf16.mxu1 %v590_v3  ;;  %v520_v20 = vpack.c.bf16 %v130_v19, %v129_v18  ;;  %v213_v22 = vld [vmem:[%s783_s5 + $0x8] sm:$0xff]  ;;  %v414_v24 = vld [vmem:[%s780_s2] ss:$0 sm:$0xff]  ;;  %v214_v29 = vld [vmem:[%s783_s5 + $0x10] sm:$0xff]  ;;  %s542_s19 = scalar_lea.vmem %s393_s18, 128  ;;  %p547_p1 = scmp.lt.s32.totalorder %s393_s18, %s393_s18 }
   0xa   :  { %v523_v23 = vpack.c.bf16 %v213_v22, %v212_v21  ;;  %v215_v30 = vld [vmem:[%s783_s5 + $0x18] sm:$0xff]  ;;  %v297_v32 = vld [vmem:[%s785_s7] sm:$0xff]  ;;  %v298_v33 = vld [vmem:[%s785_s7 + $0x8] sm:$0xff]  ;;  %p543_p0 = scmp.ne.s32.totalorder %s393_s18, %s542_s19  ;;  %p548_p2 = scmp.lt.s32.totalorder %s542_s19, %s542_s19 }
   0xb   :  { %457 = vmatmul.mubr.msk.f32.vlgmr.msra.gmra.mrb[0].mxu1 %vm48_vm1, %v36_v10  ;;  %v526_v31 = vpack.c.bf16 %v215_v30, %v214_v29  ;;  %v416_v34 = vld [vmem:[%s782_s4] ss:$0 sm:$0xff]  ;;  %v529_v36 = vpack.c.bf16 %v298_v33, %v297_v32  ;;  %v299_v39 = vld [vmem:[%s785_s7 + $0x10] sm:$0xff]  ;;  %v300_v40 = vld [vmem:[%s785_s7 + $0x18] sm:$0xff] }
   0xc   :  { %512 = vmatpush3.bf16.msra.mxu1 %v511_v11  ;;  %475 = vmatprep.mubr.msk.f32.mxu1 %vm591_vm0, %v592_v6  ;;  %v532_v41 = vpack.c.bf16 %v300_v40, %v299_v39  ;;  %v301_v42 = vld [vmem:[%s785_s7 + $0x20] sm:$0xff]  ;;  %v302_v43 = vld [vmem:[%s785_s7 + $0x28] sm:$0xff]  ;;  %p549_p3 = por %p548_p2, %p547_p1 }
   0xd   :  { %513 = vmatprep.subr.bf16.mxu1 %v590_v3  ;;  %524 = vmatpush3.bf16.msra.mxu0 %v523_v23  ;;  %v535_v44 = vpack.c.bf16 %v302_v43, %v301_v42  ;;  %v418_v45 = vld [vmem:[%s784_s6] ss:$0 sm:$0xff] }
   0xe   :  { %525 = vmatprep.subr.bf16.mxu0 %v590_v3  ;;  %p550_p4 = pnand %p549_p3, %p543_p0 }
  0x10   :  { %515 = vmatpush3.bf16.msra.mxu1 %v514_v14 }
  0x11   :  { %516 = vmatprep.subr.bf16.mxu1 %v590_v3  ;;  %527 = vmatpush3.bf16.msra.mxu0 %v526_v31 }
  0x12   :  { %528 = vmatprep.subr.bf16.mxu0 %v590_v3 }
  0x14   :  { %518 = vmatpush3.bf16.msra.mxu1 %v517_v17 }
  0x15   :  { %519 = vmatprep.subr.bf16.mxu1 %v590_v3 }
  0x18   :  { %521 = vmatpush3.bf16.msra.mxu1 %v520_v20 }
  0xde   :  { %v118_v25 = vpop.f32.mrb[0].mxu1 }
  0xdf   :  { %v119_v26 = vadd.f32 %v414_v24, %v118_v25  ;;  %v458_v27 = vpop.f32.mrb[1].mxu1 }
  0xe1   :  { %v122_v28 = vmax.f32 %v119_v26, 0.0 }
  0xe3   :  { %476 = vmatmul.mubr.msk.f32.vlgmr.msra.gmra.mrb[2].mxu1 %vm138_vm2, %v122_v28 }
 0x1b6   :  { %v208_v35 = vpop.f32.mrb[2].mxu1 }
 0x1b7   :  { %v209_v37 = vadd.f32 %v416_v34, %v208_v35  ;;  %v477_v38 = vpop.f32.mrb[3].mxu1 }
 0x1b9   :  { %384 = vst.msk [vmem:[#allocation2] sm:$0xff] %vm48_vm1, %v209_v37  ;;  %487 = vmatmul.mubr.msk.f32.vlgmr.msra.gmra.mrb[0].mxu0 %vm48_vm1, %v209_v37 }
 0x1ba   :  { %530 = vmatpush3.bf16.msra.mxu0 %v529_v36  ;;  %501 = vmatprep.mubr.msk.f32.mxu0 %vm591_vm0, %v592_v6 }
 0x1bb   :  { %531 = vmatprep.subr.bf16.mxu0 %v590_v3 }
 0x1be   :  { %533 = vmatpush3.bf16.msra.mxu0 %v532_v41 }
 0x1bf   :  { %534 = vmatprep.subr.bf16.mxu0 %v590_v3 }
 0x1c2   :  { %536 = vmatpush3.bf16.msra.mxu0 %v535_v44 }
 0x28c   :  { %v292_v46 = vpop.f32.mrb[0].mxu0 }
 0x28d   :  { %v293_v47 = vadd.f32 %v418_v45, %v292_v46  ;;  %v488_v48 = vpop.f32.mrb[1].mxu0 }
 0x28f   :  { %v296_v49 = vmax.f32 %v293_v47, 0.0 }
 0x291   :  { %502 = vmatmul.mubr.msk.f32.vlgmr.msra.gmra.mrb[2].mxu0 %vm310_vm3, %v296_v49 }
 0x292   :  { %553 = shalt.err (!%p550_p4)
}
 0x293   :  { %s554_s6 = scalar_lea.hbm %s787_s9, 128 }
 0x294   :  { %p555_p5 = scmp.ne.s32.totalorder %s787_s9, %s554_s6  ;;  %p558_p6 = scmp.lt.u32.totalorder %s554_s6, %s787_s9 }
 0x296   :  { %p560_p7 = pnand %p558_p6, %p555_p5 }
 0x298   :  { %563 = shalt.err (!%p560_p7)
}
 0x299   :  { %395 = dma.vmem_to_hbm [thread:$0]  %s393_s18, 128, %s787_s9, [#allocation3]   ;;  %v420_v50 = vld [vmem:[%s786_s8] ss:$0 sm:$0xff] }
 0x29a   :  { %s594_s26 = smov [#allocation4]  }
 0x29b   :  { %s402_s27 = sshll.u32 %s594_s26, 4  ;;  %s403_s27 = int_to_ptr.vmem [resolvable:$true] %s402_s27 }
 0x29c   :  { %s564_s28 = scalar_lea.vmem %s403_s27, 128  ;;  %p569_p9 = scmp.lt.s32.totalorder %s403_s27, %s403_s27 }
 0x29d   :  { %p565_p8 = scmp.ne.s32.totalorder %s403_s27, %s564_s28  ;;  %p570_p10 = scmp.lt.s32.totalorder %s564_s28, %s564_s28 }
 0x29f   :  { %p571_p11 = por %p570_p10, %p569_p9 }
 0x2a1   :  { %p572_p12 = pnand %p571_p11, %p565_p8 }
 0x364   :  { %v380_v51 = vpop.f32.mrb[2].mxu0 }
 0x365   :  { %v381_v52 = vadd.f32 %v420_v50, %v380_v51  ;;  %v503_v53 = vpop.f32.mrb[3].mxu0 }
 0x367   :  { %385 = vst.msk [vmem:[#allocation4] sm:$0xff] %vm48_vm1, %v381_v52 }
 0x368   :  { %575 = shalt.err (!%p572_p12)
}
 0x369   :  { %s576_s5 = scalar_lea.hbm %s788_s10, 128 }
 0x36a   :  { %p577_p13 = scmp.ne.s32.totalorder %s788_s10, %s576_s5  ;;  %p580_p0 = scmp.lt.u32.totalorder %s576_s5, %s788_s10 }
 0x36c   :  { %p582_p1 = pnand %p580_p0, %p577_p13 }
 0x36e   :  { %585 = shalt.err (!%p582_p1)
}
 0x36f   :  { %405 = dma.vmem_to_hbm [thread:$0]  %s403_s27, 128, %s788_s10, [#allocation5]  }
 0x370   :  { %586 = dma.done.wait [#allocation3], 128  }
 0x371   :  { %587 = vsyncadd [#allocation3], 4294967168 }
 0x372   :  { %588 = dma.done.wait [#allocation5], 128  }
 0x373   :  { %589 = vsyncadd [#allocation5], 4294967168 }
 0x374   :  { %412 = vsyncpa [#allocation3], 1 }
 0x375   :  { %413 = vsyncpa [#allocation5], 1 }

</bundles_post_ra>
